<compile_context>
chip_gen: v5e
topology: v5e:2x2
jax: 0.10.0
libtpu: 0.0.40
codegen_flags: <defaults>
</compile_context>

<pallas_src>
import functools

import jax
import jax.numpy as jnp
from jax.experimental import pallas as pl
from jax.experimental.pallas import tpu as pltpu


_LANE = 128          # lane width (last-dim alignment)
_TM_TARGET = 512     # output-row tile target (sublane axis of A_hat)
_TK_TARGET = 1024    # contraction (neighbor) tile target (lane axis of A_hat)
_MIB = 1024 * 1024


def _round_up(x, m):
    return -(-x // m) * m


def _largest_divisor(m, cap):
    for d in range(min(m, cap), 0, -1):
        if m % d == 0:
            return d
    return 1


def _vmem_capacity_bytes():
    try:
        info = pltpu.get_tpu_info()
        cap = getattr(info, "vmem_capacity_bytes", None)
        if cap:
            return int(cap)
    except Exception:
        pass
    return 64 * _MIB   # conservative default (v7x per-core VMEM)


def _pick_tiling(n):
    """Padded node count and (tm, tk) tiles: 128-multiples that divide n_pad."""
    base = _round_up(max(int(n), 1), _LANE)
    candidates = [base]
    if base >= 16 * _LANE:
        # Allow a little extra padding (<=6.25%) when it unlocks larger tiles.
        max_extra = base // 16
        candidates += [base + e * _LANE for e in range(1, 8)
                       if e * _LANE <= max_extra]
    best = None
    for n_pad in candidates:
        m = n_pad // _LANE
        d_tk = _largest_divisor(m, _TK_TARGET // _LANE)
        cap_tm = _TM_TARGET // _LANE
        if m >= 2:
            cap_tm = min(cap_tm, max(1, m // 2))   # >=2 row tiles (v7x megacore)
        d_tm = _largest_divisor(m, cap_tm)
        key = (d_tk, d_tm, -n_pad)
        if best is None or key > best[0]:
            best = (key, (n_pad, d_tm * _LANE, d_tk * _LANE))
    return best[1]


def _resident_footprint_bytes(n_pad, tm, tk, f_pad, out_isz):
    return (2 * tm * tk * 2            # A_hat tiles (double-buffered, bf16)
            + 2 * n_pad * f_pad * 2    # resident XW (count both buffers)
            + 2 * f_pad * 4            # bias
            + 2 * tm * f_pad * out_isz # output tile
            + tm * f_pad * 4)          # f32 accumulator scratch


# ------------------------- Pallas kernel: X @ W ---------------------------- #

def _xw_kernel(x_ref, w_ref, o_ref):
    o_ref[...] = jnp.dot(
        x_ref[...], w_ref[...], preferred_element_type=jnp.float32
    ).astype(o_ref.dtype)


def _feature_transform(x_bf16, w_bf16, *, row_tile, vmem_cap):
    """XW = X @ W, row-tiled; W (padded to 128 lanes) stays resident."""
    n_pad, f_in_pad = x_bf16.shape
    f_out_pad = w_bf16.shape[1]
    footprint = 2 * (row_tile * f_in_pad * 2
                     + f_in_pad * f_out_pad * 2
                     + row_tile * f_out_pad * 2)
    vmem_limit = int(min(int(0.9 * vmem_cap), max(32 * _MIB, 2 * footprint)))
    return pl.pallas_call(
        _xw_kernel,
        out_shape=jax.ShapeDtypeStruct((n_pad, f_out_pad), jnp.bfloat16),
        grid=(n_pad // row_tile,),
        in_specs=[
            pl.BlockSpec((row_tile, f_in_pad), lambda i: (i, 0)),
            pl.BlockSpec((f_in_pad, f_out_pad), lambda i: (0, 0)),
        ],
        out_specs=pl.BlockSpec((row_tile, f_out_pad), lambda i: (i, 0)),
        compiler_params=pltpu.CompilerParams(
            dimension_semantics=("parallel",),
            vmem_limit_bytes=vmem_limit,
        ),
    )(x_bf16, w_bf16)


# -------------- Pallas kernel: A_hat @ XW + b, XW VMEM-resident ------------ #

def _agg_resident_kernel(a_ref, xw_ref, b_ref, o_ref, acc_ref, *, tk, apply_relu):
    k = pl.program_id(1)

    @pl.when(k == 0)
    def _():
        acc_ref[...] = jnp.zeros_like(acc_ref)

    start = pl.multiple_of(k * tk, tk)
    acc_ref[...] += jnp.dot(
        a_ref[...], xw_ref[pl.ds(start, tk), :],
        preferred_element_type=jnp.float32,
    )

    @pl.when(k == pl.num_programs(1) - 1)
    def _():
        out = acc_ref[...] + b_ref[...]
        if apply_relu:
            out = jnp.maximum(out, 0.0)
        o_ref[...] = out.astype(o_ref.dtype)


def _aggregate_resident(a_bf16, xw_bf16, b_f32, *, tm, tk, apply_relu,
                        out_dtype, vmem_cap):
    n_pad = a_bf16.shape[0]
    f_pad = xw_bf16.shape[1]
    out_isz = jnp.dtype(out_dtype).itemsize
    footprint = _resident_footprint_bytes(n_pad, tm, tk, f_pad, out_isz)
    vmem_limit = int(min(int(0.92 * vmem_cap),
                         max(32 * _MIB, int(1.25 * footprint))))
    kernel = functools.partial(_agg_resident_kernel, tk=tk, apply_relu=apply_relu)
    return pl.pallas_call(
        kernel,
        out_shape=jax.ShapeDtypeStruct((n_pad, f_pad), out_dtype),
        grid=(n_pad // tm, n_pad // tk),
        in_specs=[
            pl.BlockSpec((tm, tk), lambda i, k: (i, k)),        # A_hat tile (streamed)
            pl.BlockSpec((n_pad, f_pad), lambda i, k: (0, 0)),  # XW: DMA'd once, resident
            pl.BlockSpec((1, f_pad), lambda i, k: (0, 0)),      # bias (resident)
        ],
        out_specs=pl.BlockSpec((tm, f_pad), lambda i, k: (i, 0)),
        scratch_shapes=[pltpu.VMEM((tm, f_pad), jnp.float32)],
        compiler_params=pltpu.CompilerParams(
            dimension_semantics=("parallel", "arbitrary"),
            vmem_limit_bytes=vmem_limit,
        ),
    )(a_bf16, xw_bf16, b_f32)


# -------- Pallas kernel: A_hat @ (X @ W) + b, transform fused in-loop ------ #

def _agg_fused_kernel(a_ref, x_ref, w_ref, b_ref, o_ref, acc_ref, *, apply_relu):
    k = pl.program_id(1)

    @pl.when(k == 0)
    def _():
        acc_ref[...] = jnp.zeros_like(acc_ref)

    xw = jnp.dot(x_ref[...], w_ref[...], preferred_element_type=jnp.float32)
    acc_ref[...] += jnp.dot(
        a_ref[...], xw.astype(jnp.bfloat16), preferred_element_type=jnp.float32
    )

    @pl.when(k == pl.num_programs(1) - 1)
    def _():
        out = acc_ref[...] + b_ref[...]
        if apply_relu:
            out = jnp.maximum(out, 0.0)
        o_ref[...] = out.astype(o_ref.dtype)


def _aggregate_fused(a_bf16, x_bf16, w_bf16, b_f32, *, tm, tk, apply_relu,
                     out_dtype, vmem_cap):
    n_pad = a_bf16.shape[0]
    f_in_pad = x_bf16.shape[1]
    f_out_pad = w_bf16.shape[1]
    out_isz = jnp.dtype(out_dtype).itemsize
    footprint = (2 * tm * tk * 2
                 + 2 * tk * f_in_pad * 2
                 + 2 * f_in_pad * f_out_pad * 2
                 + 2 * f_out_pad * 4
                 + 2 * tm * f_out_pad * out_isz
                 + tm * f_out_pad * 4
                 + tk * f_out_pad * 4)       # in-kernel xw temporary
    vmem_limit = int(min(int(0.92 * vmem_cap),
                         max(32 * _MIB, int(1.25 * footprint))))
    kernel = functools.partial(_agg_fused_kernel, apply_relu=apply_relu)
    return pl.pallas_call(
        kernel,
        out_shape=jax.ShapeDtypeStruct((n_pad, f_out_pad), out_dtype),
        grid=(n_pad // tm, n_pad // tk),
        in_specs=[
            pl.BlockSpec((tm, tk), lambda i, k: (i, k)),               # A_hat tile
            pl.BlockSpec((tk, f_in_pad), lambda i, k: (k, 0)),         # X neighbor rows
            pl.BlockSpec((f_in_pad, f_out_pad), lambda i, k: (0, 0)),  # W (resident)
            pl.BlockSpec((1, f_out_pad), lambda i, k: (0, 0)),         # bias (resident)
        ],
        out_specs=pl.BlockSpec((tm, f_out_pad), lambda i, k: (i, 0)),
        scratch_shapes=[pltpu.VMEM((tm, f_out_pad), jnp.float32)],
        compiler_params=pltpu.CompilerParams(
            dimension_semantics=("parallel", "arbitrary"),
            vmem_limit_bytes=vmem_limit,
        ),
    )(a_bf16, x_bf16, w_bf16, b_f32)


# ------------------------------ Layer + glue ------------------------------- #

def gcn_layer(a_bf16, h_bf16, w, b, *, tm, tk, apply_relu, out_dtype,
              vmem_cap, xw_resident_budget):
    """One GCNConv: A_hat @ (h @ W) + b, optional fused ReLU (padded shapes)."""
    f_in, f_out = w.shape
    f_in_pad = h_bf16.shape[1]
    f_out_pad = _round_up(f_out, _LANE)
    n_pad = a_bf16.shape[0]

    w_pad = (jnp.zeros((f_in_pad, f_out_pad), jnp.float32)
             .at[:f_in, :f_out].set(w.astype(jnp.float32))
             .astype(jnp.bfloat16))
    b_pad = (jnp.zeros((1, f_out_pad), jnp.float32)
             .at[0, :f_out].set(b.astype(jnp.float32)))

    out_isz = jnp.dtype(out_dtype).itemsize
    use_resident = (_resident_footprint_bytes(n_pad, tm, tk, f_out_pad, out_isz)
                    <= xw_resident_budget)

    if use_resident:
        xw = _feature_transform(h_bf16, w_pad, row_tile=tk, vmem_cap=vmem_cap)
        return _aggregate_resident(a_bf16, xw, b_pad, tm=tm, tk=tk,
                                   apply_relu=apply_relu, out_dtype=out_dtype,
                                   vmem_cap=vmem_cap)
    return _aggregate_fused(a_bf16, h_bf16, w_pad, b_pad, tm=tm, tk=tk,
                            apply_relu=apply_relu, out_dtype=out_dtype,
                            vmem_cap=vmem_cap)


def build_norm_adj(edge_index, num_nodes):
    """Dense symmetric-normalized adjacency with self loops (reference path)."""
    src, dst = edge_index[0], edge_index[1]
    a = jnp.zeros((num_nodes, num_nodes), jnp.float32)
    a = a.at[dst, src].add(1.0)                 # message j -> i lands in row i
    a = a + jnp.eye(num_nodes, dtype=jnp.float32)
    deg = jnp.sum(a, axis=1)
    d_inv_sqrt = jnp.where(deg > 0.0, 1.0 / jnp.sqrt(deg), 0.0)
    return d_inv_sqrt[:, None] * a * d_inv_sqrt[None, :]


def build_norm_adj_padded_bf16(edge_index, num_nodes, n_pad):
    """One-pass padded bf16 A_hat: scatter degrees/edges, scale, cast once."""
    src = edge_index[0].astype(jnp.int32)
    dst = edge_index[1].astype(jnp.int32)
    ones = jnp.ones(src.shape, jnp.float32)
    deg = jnp.zeros((num_nodes,), jnp.float32).at[dst].add(ones) + 1.0  # +self loop
    d = jax.lax.rsqrt(deg)
    vals = d[dst] * d[src]
    a = jnp.zeros((n_pad, n_pad), jnp.float32)
    a = a.at[dst, src].add(vals)
    idx = jnp.arange(num_nodes)
    a = a.at[idx, idx].add(d * d)
    # TODO(synk): matches the original's unconditional self-loop add; PyG's
    # add_remaining_self_loops differs when edge_index already has self loops.
    return a.astype(jnp.bfloat16)


def init_params(key, in_channels, hidden_channels, out_channels):
    """Glorot weights, zero bias (matching GCNConv defaults)."""
    def glorot(k, fan_in, fan_out):
        limit = jnp.sqrt(6.0 / (fan_in + fan_out))
        return jax.random.uniform(k, (fan_in, fan_out), jnp.float32, -limit, limit)

    k1, k2, k3 = jax.random.split(key, 3)
    return {
        "w1": glorot(k1, in_channels, hidden_channels),
        "b1": jnp.zeros((hidden_channels,), jnp.float32),
        "w2": glorot(k2, hidden_channels, hidden_channels),
        "b2": jnp.zeros((hidden_channels,), jnp.float32),
        "w3": glorot(k3, hidden_channels, out_channels),
        "b3": jnp.zeros((out_channels,), jnp.float32),
    }


def gcn_encoder_forward(x, edge_index, params, *, xw_resident_budget_bytes=None):
    n, f_in = x.shape
    n_pad, tm, tk = _pick_tiling(n)
    f_in_pad = _round_up(f_in, _LANE)

    vmem_cap = _vmem_capacity_bytes()
    if xw_resident_budget_bytes is None:
        xw_resident_budget_bytes = int(0.70 * vmem_cap)

    # A_hat built directly into its padded bf16 buffer; the same HBM array
    # feeds all three layers.
    a_bf16 = build_norm_adj_padded_bf16(edge_index, n, n_pad)
    x_pad = (jnp.zeros((n_pad, f_in_pad), jnp.bfloat16)
             .at[:n, :f_in].set(x.astype(jnp.bfloat16)))

    common = dict(tm=tm, tk=tk, vmem_cap=vmem_cap,
                  xw_resident_budget=xw_resident_budget_bytes)
    h = gcn_layer(a_bf16, x_pad, params["w1"], params["b1"],
                  apply_relu=True, out_dtype=jnp.bfloat16, **common)
    # TODO(synk): F.dropout(p=0.5, training=True) is stochastic and cannot match
    # torch RNG; implemented in eval mode (identity) here.
    h = gcn_layer(a_bf16, h, params["w2"], params["b2"],
                  apply_relu=True, out_dtype=jnp.bfloat16, **common)
    h = gcn_layer(a_bf16, h, params["w3"], params["b3"],
                  apply_relu=False, out_dtype=jnp.float32, **common)

    out_channels = params["w3"].shape[1]
    return h[:n, :out_channels]


def _reference_forward(x, edge_index, params):
    a = build_norm_adj(edge_index, x.shape[0])
    h = jnp.maximum(a @ (x @ params["w1"]) + params["b1"], 0.0)
    h = jnp.maximum(a @ (h @ params["w2"]) + params["b2"], 0.0)
    return a @ (h @ params["w3"]) + params["b3"]


# --------------------------------- main ------------------------------------ #

if __name__ == "__main__":
    key = jax.random.PRNGKey(0)
    k_x, k_e, k_p = jax.random.split(key, 3)

    num_nodes = 16
    in_channels = 8
    hidden_channels = 32
    out_channels = 16
    num_edges = 40

    x = jax.random.normal(k_x, (num_nodes, in_channels), jnp.float32)
    edge_index = jax.random.randint(k_e, (2, num_edges), 0, num_nodes, jnp.int32)
    params = init_params(k_p, in_channels, hidden_channels, out_channels)

    ref = jax.block_until_ready(_reference_forward(x, edge_index, params))

    # Path 1: VMEM-resident XW aggregation (default when it fits the budget).
    out_resident = jax.block_until_ready(gcn_encoder_forward(x, edge_index, params))
    # Path 2: fused feature-transform aggregation (large-graph fallback),
    # exercised here by forcing the residency budget to zero.
    out_fused = jax.block_until_ready(
        gcn_encoder_forward(x, edge_index, params, xw_resident_budget_bytes=0))

    for out in (out_resident, out_fused):
        assert out.shape == (num_nodes, out_channels)
        assert bool(jnp.all(jnp.isfinite(out)))
        # bf16 MXU inputs -> loose tolerance vs f32 reference.
        assert bool(jnp.allclose(out, ref, rtol=5e-2, atol=5e-2)), \
            float(jnp.max(jnp.abs(out - ref)))
    print("KERNEL_OK")
</pallas_src>

<mosaic_0001>
module attributes {stable_mosaic.version = 11 : i64} {
  func.func @_xw_kernel(%arg0: i32, %arg1: memref<128x128xbf16, #tpu.memory_space<vmem>>, %arg2: memref<128x128xbf16, #tpu.memory_space<vmem>>, %arg3: memref<128x128xbf16, #tpu.memory_space<vmem>>) attributes {dimension_semantics = [#tpu.dimension_semantics<parallel>], iteration_bounds = array<i64: 1>, scalar_prefetch = 0 : i64, scratch_operands = 0 : i64, tpu.core_type = #tpu.core_type<tc>, window_params = [{transform_indices = @transform_0, window_bounds = array<i64: 128, 128>}, {pipeline_mode = #tpu.pipeline_mode<synchronous>, transform_indices = @transform_1, window_bounds = array<i64: 128, 128>}, {transform_indices = @transform_2, window_bounds = array<i64: 128, 128>}]} {
    %c0 = arith.constant 0 : index
    %c0_0 = arith.constant 0 : index
    %0 = vector.load %arg1[%c0, %c0_0] : memref<128x128xbf16, #tpu.memory_space<vmem>>, vector<128x128xbf16>
    %c0_1 = arith.constant 0 : index
    %c0_2 = arith.constant 0 : index
    %1 = vector.load %arg2[%c0_1, %c0_2] : memref<128x128xbf16, #tpu.memory_space<vmem>>, vector<128x128xbf16>
    %cst = arith.constant dense<0.000000e+00> : vector<128x128xf32>
    %2 = tpu.matmul %0, %1, %cst {dimension_numbers = #tpu.dot_dimension_numbers<[1], [0], [0], [1], [0, 0, 1, 1], [], []>} : vector<128x128xbf16>, vector<128x128xbf16>, vector<128x128xf32> -> vector<128x128xf32>
    %3 = arith.truncf %2 : vector<128x128xf32> to vector<128x128xbf16>
    %c0_3 = arith.constant 0 : index
    %c0_4 = arith.constant 0 : index
    %4 = vector.load %arg3[%c0_3, %c0_4] : memref<128x128xbf16, #tpu.memory_space<vmem>>, vector<128x128xbf16>
    tpu.vector_store %arg3[%c0_3, %c0_4], %3 {strides = array<i32>} : memref<128x128xbf16, #tpu.memory_space<vmem>>, vector<128x128xbf16>,
    return
  }
  func.func @transform_0(%arg0: i32) -> (i32, i32) {
    %c0_i32 = arith.constant 0 : i32
    %c0_i32_0 = arith.constant 0 : i32
    return %arg0, %c0_i32 : i32, i32
  }
  func.func @transform_1(%arg0: i32) -> (i32, i32) {
    %c0_i32 = arith.constant 0 : i32
    %c0_i32_0 = arith.constant 0 : i32
    %c0_i32_1 = arith.constant 0 : i32
    return %c0_i32, %c0_i32_0 : i32, i32
  }
  func.func @transform_2(%arg0: i32) -> (i32, i32) {
    %c0_i32 = arith.constant 0 : i32
    %c0_i32_0 = arith.constant 0 : i32
    return %arg0, %c0_i32 : i32, i32
  }
}

</mosaic_0001>

<bundles_post_ra>
// kernel: tpu_custom_call.1
= control target key start
LH: loop header
LB: loop body
LE: loop exit
PB: predicated region body
PF: predicated region fallthrough
CT: control target
= control target key end

     0   :  { %7 = vsyncpa [#allocation3], 0  ;;  %s545_s0 = inlined_call_operand.hbm [shape: bf16[128,128], index: 0, kind: input, shape index: {}]   ;;  %s546_s1 = inlined_call_operand.hbm [shape: bf16[128,128], index: 1, kind: input, shape index: {}]   ;;  %s547_s2 = inlined_call_operand.hbm [shape: bf16[128,128], index: 2, kind: output, shape index: {}]  }
   0x1   :  { %8 = vsyncpa [#allocation6], 0 }
   0x2   :  { %9 = vsyncpa [#allocation4], 0  ;;  %s14_s11 = sshll.u32 %s545_s0, 4  ;;  %s507_s12 = smov [#allocation2]   ;;  %s15_s11 = int_to_ptr.hbm [resolvable:$true] %s14_s11 }
   0x3   :  { %s16_s13 = sshll.u32 %s507_s12, 4  ;;  %s27_s16 = sshll.u32 %s546_s1, 4  ;;  %s17_s13 = int_to_ptr.vmem [resolvable:$true] %s16_s13  ;;  %s28_s16 = int_to_ptr.hbm [resolvable:$true] %s27_s16 }
   0x4   :  { %s508_s17 = smov 64   ;;  %s509_s18 = smov 4  }
   0x5   :  { %22 = dma.hbm_to_vmem [thread:$0]  %s15_s11, 1024, %s17_s13, [#allocation3], %s508_s17, %s508_s17, %s509_s18  }
   0x6   :  { %s510_s19 = smov [#allocation5]  }
   0x7   :  { %s29_s20 = sshll.u32 %s510_s19, 4  ;;  %s30_s20 = int_to_ptr.vmem [resolvable:$true] %s29_s20 }
   0x8   :  { %35 = dma.hbm_to_vmem [thread:$0]  %s28_s16, 1024, %s30_s20, [#allocation6], %s508_s17, %s508_s17, %s509_s18  }
   0x9   :  { %501 = dma.done.wait [#allocation3], 1024  }
   0xa   :  { %502 = vsyncadd [#allocation3], 4294966272 }
   0xb   :  { %503 = dma.done.wait [#allocation6], 1024  }
   0xc   :  { %504 = vsyncadd [#allocation6], 4294966272  ;;  %v352_v0 = vld [vmem:[#allocation5 + $0x38] sm:$0xff]  ;;  %v351_v1 = vld [vmem:[#allocation5 + $0x30] sm:$0xff]  ;;  %s511_s0 = smov [#allocation7]   ;;  %s259_s23 = sshll.u32 %s547_s2, 4  ;;  %s260_s23 = int_to_ptr.hbm [resolvable:$true] %s259_s23 }
   0xd   :  { %172 = vmatpush.bf16.msra.mxu0 %v352_v0  ;;  %400 = vmatpush.bf16.msra.mxu1 %v352_v0  ;;  %v350_v2 = vld [vmem:[#allocation5 + $0x28] sm:$0xff]  ;;  %v349_v3 = vld [vmem:[#allocation5 + $0x20] sm:$0xff]  ;;  %v348_v4 = vld [vmem:[#allocation5 + $0x18] sm:$0xff]  ;;  %s257_s1 = sshll.u32 %s511_s0, 4  ;;  %s258_s1 = int_to_ptr.vmem [resolvable:$true] %s257_s1 }
   0xe   :  { %401 = vmatpush.bf16.msra.mxu2 %v352_v0  ;;  %402 = vmatpush.bf16.msra.mxu3 %v352_v0  ;;  %v347_v5 = vld [vmem:[#allocation5 + $0x10] sm:$0xff]  ;;  %v346_v6 = vld [vmem:[#allocation5 + $0x8] sm:$0xff]  ;;  %v345_v7 = vld [vmem:[#allocation5] sm:$0xff] }
   0xf   :  { %v337_v8 = vld [vmem:[#allocation2] sm:$0xff]  ;;  %v339_v9 = vld [vmem:[#allocation2 + $0x10] sm:$0xff]  ;;  %v338_v12 = vld [vmem:[#allocation2 + $0x8] sm:$0xff] }
  0x10   :  { %v341_v10 = vld [vmem:[#allocation2 + $0x20] sm:$0xff]  ;;  %v343_v11 = vld [vmem:[#allocation2 + $0x30] sm:$0xff]  ;;  %v340_v13 = vld [vmem:[#allocation2 + $0x18] sm:$0xff] }
  0x11   :  { %173 = vmatpush.bf16.msra.mxu0 %v351_v1  ;;  %403 = vmatpush.bf16.msra.mxu1 %v351_v1  ;;  %v342_v14 = vld [vmem:[#allocation2 + $0x28] sm:$0xff]  ;;  %v344_v15 = vld [vmem:[#allocation2 + $0x38] sm:$0xff] }
  0x12   :  { %404 = vmatpush.bf16.msra.mxu2 %v351_v1  ;;  %405 = vmatpush.bf16.msra.mxu3 %v351_v1 }
  0x15   :  { %174 = vmatpush.bf16.msra.mxu0 %v350_v2  ;;  %406 = vmatpush.bf16.msra.mxu1 %v350_v2 }
  0x16   :  { %407 = vmatpush.bf16.msra.mxu2 %v350_v2  ;;  %408 = vmatpush.bf16.msra.mxu3 %v350_v2 }
  0x19   :  { %175 = vmatpush.bf16.msra.mxu0 %v349_v3  ;;  %409 = vmatpush.bf16.msra.mxu1 %v349_v3 }
  0x1a   :  { %410 = vmatpush.bf16.msra.mxu2 %v349_v3  ;;  %411 = vmatpush.bf16.msra.mxu3 %v349_v3 }
  0x1d   :  { %176 = vmatpush.bf16.msra.mxu0 %v348_v4  ;;  %412 = vmatpush.bf16.msra.mxu1 %v348_v4 }
  0x1e   :  { %413 = vmatpush.bf16.msra.mxu2 %v348_v4  ;;  %414 = vmatpush.bf16.msra.mxu3 %v348_v4 }
  0x21   :  { %177 = vmatpush.bf16.msra.mxu0 %v347_v5  ;;  %415 = vmatpush.bf16.msra.mxu1 %v347_v5 }
  0x22   :  { %416 = vmatpush.bf16.msra.mxu2 %v347_v5  ;;  %417 = vmatpush.bf16.msra.mxu3 %v347_v5 }
  0x25   :  { %178 = vmatpush.bf16.msra.mxu0 %v346_v6  ;;  %418 = vmatpush.bf16.msra.mxu1 %v346_v6 }
  0x26   :  { %419 = vmatpush.bf16.msra.mxu2 %v346_v6  ;;  %420 = vmatpush.bf16.msra.mxu3 %v346_v6 }
  0x29   :  { %179 = vmatpush.bf16.msra.mxu0 %v345_v7  ;;  %421 = vmatpush.bf16.msra.mxu1 %v345_v7 }
  0x2a   :  { %422 = vmatpush.bf16.msra.mxu2 %v345_v7  ;;  %423 = vmatpush.bf16.msra.mxu3 %v345_v7 }
  0x2c   :  { %180 = vmatmul.bf16.vlgmr.msra.gmra.mxu0 %v337_v8  ;;  %190 = vmatmul.bf16.vlgmr.msra.gmra.mxu1 %v339_v9 }
  0x2d   :  { %200 = vmatmul.bf16.vlgmr.msra.gmra.mxu2 %v341_v10  ;;  %210 = vmatmul.bf16.vlgmr.msra.gmra.mxu3 %v343_v11 }
  0x3c   :  { %185 = vmatmul.bf16.gmra.mxu0 %v338_v12  ;;  %195 = vmatmul.bf16.gmra.mxu1 %v340_v13 }
  0x3d   :  { %205 = vmatmul.bf16.gmra.mxu2 %v342_v14  ;;  %215 = vmatmul.bf16.gmra.mxu3 %v344_v15 }
  0xa9   :  { %v181_v16 = vpop.f32.mrf.mxu0  ;;  %v191_v17 = vpop.f32.mrf.mxu1 }
  0xb0   :  { %v201_v18 = vpop.f32.mrf.mxu2  ;;  %v211_v19 = vpop.f32.mrf.mxu3 }
  0xb1   :  { %v183_v20 = vpop.f32.mrf.mxu0  ;;  %v193_v21 = vpop.f32.mrf.mxu1 }
  0xb2   :  { %v356_v22 = vpack.c.bf16 %v183_v20, %v181_v16  ;;  %v366_v23 = vpack.c.bf16 %v193_v21, %v191_v17 }
  0xb4   :  { %357 = vst [vmem:[#allocation7] sm:$0xff] %v356_v22  }
  0xb5   :  { %394 = vst [vmem:[#allocation7 + $0x10] sm:$0xff] %v366_v23  }
  0xb8   :  { %v203_v24 = vpop.f32.mrf.mxu2  ;;  %v213_v25 = vpop.f32.mrf.mxu3 }
  0xb9   :  { %v376_v26 = vpack.c.bf16 %v203_v24, %v201_v18  ;;  %v386_v27 = vpack.c.bf16 %v213_v25, %v211_v19  ;;  %v186_v28 = vpop.f32.mrf.mxu0  ;;  %v196_v29 = vpop.f32.mrf.mxu1 }
  0xbb   :  { %396 = vst [vmem:[#allocation7 + $0x20] sm:$0xff] %v376_v26  }
  0xbc   :  { %398 = vst [vmem:[#allocation7 + $0x30] sm:$0xff] %v386_v27  }
  0xc0   :  { %v206_v30 = vpop.f32.mrf.mxu2  ;;  %v216_v31 = vpop.f32.mrf.mxu3 }
  0xc1   :  { %v188_v32 = vpop.f32.mrf.mxu0  ;;  %v198_v33 = vpop.f32.mrf.mxu1 }
  0xc2   :  { %v361_v34 = vpack.c.bf16 %v188_v32, %v186_v28  ;;  %v371_v35 = vpack.c.bf16 %v198_v33, %v196_v29 }
  0xc4   :  { %393 = vst [vmem:[#allocation7 + $0x8] sm:$0xff] %v361_v34  }
  0xc5   :  { %395 = vst [vmem:[#allocation7 + $0x18] sm:$0xff] %v371_v35  }
  0xc8   :  { %v208_v36 = vpop.f32.mrf.mxu2  ;;  %v218_v37 = vpop.f32.mrf.mxu3 }
  0xc9   :  { %v381_v38 = vpack.c.bf16 %v208_v36, %v206_v30  ;;  %v391_v39 = vpack.c.bf16 %v218_v37, %v216_v31 }
  0xcb   :  { %397 = vst [vmem:[#allocation7 + $0x28] sm:$0xff] %v381_v38  }
  0xcc   :  { %399 = vst [vmem:[#allocation7 + $0x38] sm:$0xff] %v391_v39  }
  0xcd   :  { %265 = dma.vmem_to_hbm [thread:$0]  %s258_s1, 1024, %s260_s23, [#allocation4], %s508_s17, %s508_s17, %s509_s18  }
  0xce   :  { %505 = dma.done.wait [#allocation4], 1024  }
  0xcf   :  { %506 = vsyncadd [#allocation4], 4294966272 }
  0xd0   :  { %270 = vsyncpa [#allocation3], 1 }
  0xd1   :  { %271 = vsyncpa [#allocation6], 1 }
  0xd2   :  { %272 = vsyncpa [#allocation4], 1 }

</bundles_post_ra>
